<compile_context>
chip_gen: v7x
topology: tpu7x:2x2x1
jax: 0.10.0
libtpu: 0.0.40
codegen_flags: <defaults>
</compile_context>

<pallas_src>
import functools

import jax
import jax.numpy as jnp
from jax.experimental import pallas as pl
from jax.experimental.pallas import tpu as pltpu


_MAX_DMAS_PER_CORE = 4     # concurrent in-flight DMAs issued per TensorCore
_MIN_CHUNK_BYTES = 1024    # don't bother splitting below this granularity


def _chunk_layout(rows: int, row_bytes: int, max_chunks: int = _MAX_DMAS_PER_CORE):
    """Static (offset, size) row-chunks covering [0, rows)."""
    if rows <= 0:
        return []
    by_bytes = max(1, (rows * row_bytes) // _MIN_CHUNK_BYTES)
    n = max(1, min(max_chunks, rows, by_bytes))
    base, rem = divmod(rows, n)
    chunks, off = [], 0
    for i in range(n):
        size = base + (1 if i < rem else 0)
        chunks.append((off, size))
        off += size
    return chunks


def _mean_copy_kernel(x_ref, o_ref, sems, *, chunks, rows_per_core,
                      tail_start, tail_rows, num_cores):
    """Identity copy via multiple concurrent HBM->HBM DMAs.

    Each grid program ("core") copies rows
    [core*rows_per_core, (core+1)*rows_per_core) using len(chunks) outstanding
    DMAs.  A remainder of < num_cores rows is copied by the last core.
    """
    core = pl.program_id(0)
    base = core * rows_per_core
    n = len(chunks)

    # Start all chunk DMAs for this core (kept in flight concurrently).
    copies = []
    for idx, (off, size) in enumerate(chunks):
        cp = pltpu.make_async_copy(
            x_ref.at[pl.ds(base + off, size)],
            o_ref.at[pl.ds(base + off, size)],
            sems.at[core, idx],
        )
        cp.start()
        copies.append(cp)

    if tail_rows > 0:
        tail_src = x_ref.at[pl.ds(tail_start, tail_rows)]
        tail_dst = o_ref.at[pl.ds(tail_start, tail_rows)]

        @pl.when(core == num_cores - 1)
        def _start_tail():
            pltpu.make_async_copy(tail_src, tail_dst, sems.at[core, n]).start()

    # Wait for everything this core issued.
    for cp in copies:
        cp.wait()

    if tail_rows > 0:
        @pl.when(core == num_cores - 1)
        def _wait_tail():
            pltpu.make_async_copy(tail_src, tail_dst, sems.at[core, n]).wait()


def _pallas_materialized_copy(x: jax.Array) -> jax.Array:
    """Fresh output buffer filled by concurrent HBM->HBM DMAs (zero VMEM)."""
    # Collapse to 2-D (rows, cols): leading dims merged, last dim kept so each
    # DMA chunk is a contiguous run of full rows.
    if x.ndim >= 2:
        cols = x.shape[-1]
        rows = x.size // cols
    else:  # 1-D
        rows, cols = x.shape[0], 1
    x2 = x.reshape(rows, cols)

    itemsize = x.dtype.itemsize
    nbytes = x.size * itemsize

    num_cores = 2 if rows >= 2 else 1          # megacore split (v7x); harmless on 1-TC chips
    rows_per_core = rows // num_cores
    tail_rows = rows - num_cores * rows_per_core
    tail_start = num_cores * rows_per_core
    chunks = tuple(_chunk_layout(rows_per_core, cols * itemsize))
    sem_cols = len(chunks) + (1 if tail_rows > 0 else 0)

    kernel = functools.partial(
        _mean_copy_kernel,
        chunks=chunks,
        rows_per_core=rows_per_core,
        tail_start=tail_start,
        tail_rows=tail_rows,
        num_cores=num_cores,
    )

    y2 = pl.pallas_call(
        kernel,
        out_shape=jax.ShapeDtypeStruct((rows, cols), x.dtype),
        grid_spec=pltpu.PrefetchScalarGridSpec(
            num_scalar_prefetch=0,
            grid=(num_cores,),
            # Pin both operands to HBM: raw refs, no auto-DMA, no VMEM use.
            in_specs=[pl.BlockSpec(memory_space=pltpu.MemorySpace.HBM)],
            out_specs=pl.BlockSpec(memory_space=pltpu.MemorySpace.HBM),
            scratch_shapes=[pltpu.SemaphoreType.DMA((num_cores, sem_cols))],
        ),
        compiler_params=pltpu.CompilerParams(
            dimension_semantics=("parallel",),
        ),
        cost_estimate=pl.CostEstimate(
            flops=0, transcendentals=0, bytes_accessed=2 * nbytes),
    )(x2)
    return y2.reshape(x.shape)


def mean_forward(x: jax.Array, *, materialize: bool = False,
                 copy_impl: str = "pallas") -> jax.Array:
    """JAX/Pallas equivalent of Mean.forward.

    Mean.forward is numerically an identity (the MeanTensor tag has no numeric
    effect), so the default — and fastest — implementation is `return x`.
    Note: the "same object" property only holds eagerly; under jit the traced
    identity may still yield a distinct (possibly aliased) buffer.

    materialize=True forces a distinct output buffer:
      * copy_impl="xla"    -> jnp.copy(x); XLA can fuse or elide it (preferred
                              unless a kernel-owned buffer is required).
      * copy_impl="pallas" -> Pallas kernel issuing multiple concurrent
                              HBM->HBM DMAs, split across both TensorCores.
    """
    if not materialize:
        return x

    if x.ndim == 0 or x.size == 0 or copy_impl == "xla":
        # Degenerate shapes not worth a kernel, or XLA-managed copy requested.
        return jnp.copy(x)

    return _pallas_materialized_copy(x)


class Mean:
    """Minimal JAX analogue of the PyTorch Mean output module."""

    def __init__(self, name, shape):
        self.name = name
        if isinstance(shape, int):
            self.n_features = shape
        else:
            self.n_features = shape[0]
        # TODO(synk): StatsTracker running-statistics bookkeeping has no effect
        # on the forward computation; omitted.

    def __call__(self, x, *, materialize: bool = False, copy_impl: str = "pallas"):
        return mean_forward(x, materialize=materialize, copy_impl=copy_impl)


if __name__ == "__main__":
    key = jax.random.PRNGKey(0)
    # NCHW input consistent with a conv-style retrieval backbone.
    x = jax.random.normal(key, (2, 4, 16, 16), dtype=jnp.float32)

    module = Mean("surface_precip", shape=4)

    # Zero-cost identity path (the recommended default).
    y_fast = module(x)
    assert y_fast is x

    # Pallas path: concurrent HBM->HBM DMA copy into a fresh buffer.
    y = jax.block_until_ready(module(x, materialize=True))
    assert y.shape == x.shape and y.dtype == x.dtype
    assert bool(jnp.array_equal(y, x)), "Mean.forward must be an identity map"

    # XLA-copy path (fusable / elidable alternative).
    y_xla = jax.block_until_ready(module(x, materialize=True, copy_impl="xla"))
    assert bool(jnp.array_equal(y_xla, x))

    # Odd leading-row count exercises the tail-DMA path.
    x_odd = jax.random.normal(key, (3, 5, 16), dtype=jnp.bfloat16)
    y_odd = jax.block_until_ready(mean_forward(x_odd, materialize=True))
    assert y_odd.shape == x_odd.shape and y_odd.dtype == x_odd.dtype
    assert bool(jnp.array_equal(y_odd, x_odd))

    print("KERNEL_OK")
</pallas_src>

<mosaic_0001>
module attributes {stable_mosaic.version = 11 : i64} {
  func.func @_mean_copy_kernel(%arg0: i32, %arg1: memref<128x16xf32, #tpu.memory_space<hbm>>, %arg2: memref<128x16xf32, #tpu.memory_space<hbm>>, %arg3: memref<2x4x!tpu.dma_semaphore, #tpu.memory_space<semaphore_mem>>) attributes {dimension_semantics = [#tpu.dimension_semantics<parallel>], iteration_bounds = array<i64: 2>, scalar_prefetch = 0 : i64, scratch_operands = 1 : i64, tpu.core_type = #tpu.core_type<tc>, window_params = [{}, {}]} {
    %c64_i32 = arith.constant 64 : i32
    %0 = arith.muli %arg0, %c64_i32 : i32
    %c0_i32 = arith.constant 0 : i32
    %1 = arith.addi %0, %c0_i32 : i32
    %c0_i32_0 = arith.constant 0 : i32
    %2 = arith.addi %0, %c0_i32_0 : i32
    %c0_i32_1 = arith.constant 0 : i32
    %c0_i32_2 = arith.constant 0 : i32
    %3 = tpu.memref_slice %arg1[%1, %c0_i32_2] : memref<128x16xf32, #tpu.memory_space<hbm>> -> memref<16x16xf32, #tpu.memory_space<hbm>>
    %c0_i32_3 = arith.constant 0 : i32
    %4 = tpu.memref_slice %arg2[%2, %c0_i32_3] : memref<128x16xf32, #tpu.memory_space<hbm>> -> memref<16x16xf32, #tpu.memory_space<hbm>>
    %5 = tpu.memref_slice %arg3[%arg0, %c0_i32_1] : memref<2x4x!tpu.dma_semaphore, #tpu.memory_space<semaphore_mem>> -> memref<1x1x!tpu.dma_semaphore, #tpu.memory_space<semaphore_mem>>
    %6 = tpu.memref_squeeze %5 : memref<1x1x!tpu.dma_semaphore, #tpu.memory_space<semaphore_mem>> -> memref<!tpu.dma_semaphore, #tpu.memory_space<semaphore_mem>>
    tpu.enqueue_dma source(%3 : memref<16x16xf32, #tpu.memory_space<hbm>>) target(%4 : memref<16x16xf32, #tpu.memory_space<hbm>>) target_semaphore(%6 : memref<!tpu.dma_semaphore, #tpu.memory_space<semaphore_mem>>)
    %c16_i32 = arith.constant 16 : i32
    %7 = arith.addi %0, %c16_i32 : i32
    %c16_i32_4 = arith.constant 16 : i32
    %8 = arith.addi %0, %c16_i32_4 : i32
    %c1_i32 = arith.constant 1 : i32
    %c0_i32_5 = arith.constant 0 : i32
    %9 = tpu.memref_slice %arg1[%7, %c0_i32_5] : memref<128x16xf32, #tpu.memory_space<hbm>> -> memref<16x16xf32, #tpu.memory_space<hbm>>
    %c0_i32_6 = arith.constant 0 : i32
    %10 = tpu.memref_slice %arg2[%8, %c0_i32_6] : memref<128x16xf32, #tpu.memory_space<hbm>> -> memref<16x16xf32, #tpu.memory_space<hbm>>
    %11 = tpu.memref_slice %arg3[%arg0, %c1_i32] : memref<2x4x!tpu.dma_semaphore, #tpu.memory_space<semaphore_mem>> -> memref<1x1x!tpu.dma_semaphore, #tpu.memory_space<semaphore_mem>>
    %12 = tpu.memref_squeeze %11 : memref<1x1x!tpu.dma_semaphore, #tpu.memory_space<semaphore_mem>> -> memref<!tpu.dma_semaphore, #tpu.memory_space<semaphore_mem>>
    tpu.enqueue_dma source(%9 : memref<16x16xf32, #tpu.memory_space<hbm>>) target(%10 : memref<16x16xf32, #tpu.memory_space<hbm>>) target_semaphore(%12 : memref<!tpu.dma_semaphore, #tpu.memory_space<semaphore_mem>>)
    %c32_i32 = arith.constant 32 : i32
    %13 = arith.addi %0, %c32_i32 : i32
    %c32_i32_7 = arith.constant 32 : i32
    %14 = arith.addi %0, %c32_i32_7 : i32
    %c2_i32 = arith.constant 2 : i32
    %c0_i32_8 = arith.constant 0 : i32
    %15 = tpu.memref_slice %arg1[%13, %c0_i32_8] : memref<128x16xf32, #tpu.memory_space<hbm>> -> memref<16x16xf32, #tpu.memory_space<hbm>>
    %c0_i32_9 = arith.constant 0 : i32
    %16 = tpu.memref_slice %arg2[%14, %c0_i32_9] : memref<128x16xf32, #tpu.memory_space<hbm>> -> memref<16x16xf32, #tpu.memory_space<hbm>>
    %17 = tpu.memref_slice %arg3[%arg0, %c2_i32] : memref<2x4x!tpu.dma_semaphore, #tpu.memory_space<semaphore_mem>> -> memref<1x1x!tpu.dma_semaphore, #tpu.memory_space<semaphore_mem>>
    %18 = tpu.memref_squeeze %17 : memref<1x1x!tpu.dma_semaphore, #tpu.memory_space<semaphore_mem>> -> memref<!tpu.dma_semaphore, #tpu.memory_space<semaphore_mem>>
    tpu.enqueue_dma source(%15 : memref<16x16xf32, #tpu.memory_space<hbm>>) target(%16 : memref<16x16xf32, #tpu.memory_space<hbm>>) target_semaphore(%18 : memref<!tpu.dma_semaphore, #tpu.memory_space<semaphore_mem>>)
    %c48_i32 = arith.constant 48 : i32
    %19 = arith.addi %0, %c48_i32 : i32
    %c48_i32_10 = arith.constant 48 : i32
    %20 = arith.addi %0, %c48_i32_10 : i32
    %c3_i32 = arith.constant 3 : i32
    %c0_i32_11 = arith.constant 0 : i32
    %21 = tpu.memref_slice %arg1[%19, %c0_i32_11] : memref<128x16xf32, #tpu.memory_space<hbm>> -> memref<16x16xf32, #tpu.memory_space<hbm>>
    %c0_i32_12 = arith.constant 0 : i32
    %22 = tpu.memref_slice %arg2[%20, %c0_i32_12] : memref<128x16xf32, #tpu.memory_space<hbm>> -> memref<16x16xf32, #tpu.memory_space<hbm>>
    %23 = tpu.memref_slice %arg3[%arg0, %c3_i32] : memref<2x4x!tpu.dma_semaphore, #tpu.memory_space<semaphore_mem>> -> memref<1x1x!tpu.dma_semaphore, #tpu.memory_space<semaphore_mem>>
    %24 = tpu.memref_squeeze %23 : memref<1x1x!tpu.dma_semaphore, #tpu.memory_space<semaphore_mem>> -> memref<!tpu.dma_semaphore, #tpu.memory_space<semaphore_mem>>
    tpu.enqueue_dma source(%21 : memref<16x16xf32, #tpu.memory_space<hbm>>) target(%22 : memref<16x16xf32, #tpu.memory_space<hbm>>) target_semaphore(%24 : memref<!tpu.dma_semaphore, #tpu.memory_space<semaphore_mem>>)
    %c0_i32_13 = arith.constant 0 : i32
    %c0_i32_14 = arith.constant 0 : i32
    %25 = tpu.memref_slice %arg1[%1, %c0_i32_14] : memref<128x16xf32, #tpu.memory_space<hbm>> -> memref<16x16xf32, #tpu.memory_space<hbm>>
    %c0_i32_15 = arith.constant 0 : i32
    %26 = tpu.memref_slice %arg2[%2, %c0_i32_15] : memref<128x16xf32, #tpu.memory_space<hbm>> -> memref<16x16xf32, #tpu.memory_space<hbm>>
    %27 = tpu.memref_slice %arg3[%arg0, %c0_i32_13] : memref<2x4x!tpu.dma_semaphore, #tpu.memory_space<semaphore_mem>> -> memref<1x1x!tpu.dma_semaphore, #tpu.memory_space<semaphore_mem>>
    %28 = tpu.memref_squeeze %27 : memref<1x1x!tpu.dma_semaphore, #tpu.memory_space<semaphore_mem>> -> memref<!tpu.dma_semaphore, #tpu.memory_space<semaphore_mem>>
    tpu.wait_dma2 semaphore(%28 : memref<!tpu.dma_semaphore, #tpu.memory_space<semaphore_mem>>) src(%25 : memref<16x16xf32, #tpu.memory_space<hbm>>) dst(%26 : memref<16x16xf32, #tpu.memory_space<hbm>>)
    %c1_i32_16 = arith.constant 1 : i32
    %c0_i32_17 = arith.constant 0 : i32
    %29 = tpu.memref_slice %arg1[%7, %c0_i32_17] : memref<128x16xf32, #tpu.memory_space<hbm>> -> memref<16x16xf32, #tpu.memory_space<hbm>>
    %c0_i32_18 = arith.constant 0 : i32
    %30 = tpu.memref_slice %arg2[%8, %c0_i32_18] : memref<128x16xf32, #tpu.memory_space<hbm>> -> memref<16x16xf32, #tpu.memory_space<hbm>>
    %31 = tpu.memref_slice %arg3[%arg0, %c1_i32_16] : memref<2x4x!tpu.dma_semaphore, #tpu.memory_space<semaphore_mem>> -> memref<1x1x!tpu.dma_semaphore, #tpu.memory_space<semaphore_mem>>
    %32 = tpu.memref_squeeze %31 : memref<1x1x!tpu.dma_semaphore, #tpu.memory_space<semaphore_mem>> -> memref<!tpu.dma_semaphore, #tpu.memory_space<semaphore_mem>>
    tpu.wait_dma2 semaphore(%32 : memref<!tpu.dma_semaphore, #tpu.memory_space<semaphore_mem>>) src(%29 : memref<16x16xf32, #tpu.memory_space<hbm>>) dst(%30 : memref<16x16xf32, #tpu.memory_space<hbm>>)
    %c2_i32_19 = arith.constant 2 : i32
    %c0_i32_20 = arith.constant 0 : i32
    %33 = tpu.memref_slice %arg1[%13, %c0_i32_20] : memref<128x16xf32, #tpu.memory_space<hbm>> -> memref<16x16xf32, #tpu.memory_space<hbm>>
    %c0_i32_21 = arith.constant 0 : i32
    %34 = tpu.memref_slice %arg2[%14, %c0_i32_21] : memref<128x16xf32, #tpu.memory_space<hbm>> -> memref<16x16xf32, #tpu.memory_space<hbm>>
    %35 = tpu.memref_slice %arg3[%arg0, %c2_i32_19] : memref<2x4x!tpu.dma_semaphore, #tpu.memory_space<semaphore_mem>> -> memref<1x1x!tpu.dma_semaphore, #tpu.memory_space<semaphore_mem>>
    %36 = tpu.memref_squeeze %35 : memref<1x1x!tpu.dma_semaphore, #tpu.memory_space<semaphore_mem>> -> memref<!tpu.dma_semaphore, #tpu.memory_space<semaphore_mem>>
    tpu.wait_dma2 semaphore(%36 : memref<!tpu.dma_semaphore, #tpu.memory_space<semaphore_mem>>) src(%33 : memref<16x16xf32, #tpu.memory_space<hbm>>) dst(%34 : memref<16x16xf32, #tpu.memory_space<hbm>>)
    %c3_i32_22 = arith.constant 3 : i32
    %c0_i32_23 = arith.constant 0 : i32
    %37 = tpu.memref_slice %arg1[%19, %c0_i32_23] : memref<128x16xf32, #tpu.memory_space<hbm>> -> memref<16x16xf32, #tpu.memory_space<hbm>>
    %c0_i32_24 = arith.constant 0 : i32
    %38 = tpu.memref_slice %arg2[%20, %c0_i32_24] : memref<128x16xf32, #tpu.memory_space<hbm>> -> memref<16x16xf32, #tpu.memory_space<hbm>>
    %39 = tpu.memref_slice %arg3[%arg0, %c3_i32_22] : memref<2x4x!tpu.dma_semaphore, #tpu.memory_space<semaphore_mem>> -> memref<1x1x!tpu.dma_semaphore, #tpu.memory_space<semaphore_mem>>
    %40 = tpu.memref_squeeze %39 : memref<1x1x!tpu.dma_semaphore, #tpu.memory_space<semaphore_mem>> -> memref<!tpu.dma_semaphore, #tpu.memory_space<semaphore_mem>>
    tpu.wait_dma2 semaphore(%40 : memref<!tpu.dma_semaphore, #tpu.memory_space<semaphore_mem>>) src(%37 : memref<16x16xf32, #tpu.memory_space<hbm>>) dst(%38 : memref<16x16xf32, #tpu.memory_space<hbm>>)
    return
  }
}

</mosaic_0001>

<bundles_post_ra>
// kernel: tpu_custom_call.1
= control target key start
LH: loop header
LB: loop body
LE: loop exit
PB: predicated region body
PF: predicated region fallthrough
CT: control target
= control target key end

     0   :  { %s414_s6 = smov 0   ;;  %s430_s0 = inlined_call_operand.vmem [shape: f32[128,16], index: 0, kind: input, shape index: {}]   ;;  %s431_s1 = inlined_call_operand.vmem [shape: f32[128,16], index: 1, kind: output, shape index: {}]  }
   0x1 LB: > { %s343_s7 = sshll.u32 %s402_s6, 6  ;;  %s344_s8 = sshll.u32 %s402_s6, 2  ;;  %s402_s6 = sphi %s414_s6, %s11_s6  }
   0x2   : > { %s14_s11 = scalar_lea.vmem %s430_s0, %s343_s7  ;;  %s15_s14 = scalar_lea.vmem %s431_s1, %s343_s7 }
   0x3   : > { %v50_v0 = vld [vmem:[%s14_s11] sm:$0xff]  ;;  %v52_v1 = vld [vmem:[%s14_s11 + $0x8] sm:$0xff]  ;;  %s17_s15 = scalar_lea.sflag [#allocation2], %s344_s8 }
   0x4   : > { %51 = vst [vmem:[%s15_s14] sm:$0xff] %v50_v0  ;;  %53 = vst [vmem:[%s15_s14 + $0x8] sm:$0xff] %v52_v1 }
   0x5   : > { %61 = vsyncadd %s17_s15, 256  ;;  %s287_s16 = scalar_lea.sflag %s17_s15, 1 [#allocation2]  ;;  %v348_v2 = vld [vmem:[%s14_s11 + $0x10] sm:$0xff]  ;;  %v350_v3 = vld [vmem:[%s14_s11 + $0x18] sm:$0xff] }
   0x6   : > { %349 = vst [vmem:[%s15_s14 + $0x10] sm:$0xff] %v348_v2  ;;  %351 = vst [vmem:[%s15_s14 + $0x18] sm:$0xff] %v350_v3 }
   0x7   : > { %110 = vsyncadd %s287_s16, 256  ;;  %s296_s17 = scalar_lea.sflag %s17_s15, 2 [#allocation2]  ;;  %v357_v4 = vld [vmem:[%s14_s11 + $0x20] sm:$0xff]  ;;  %v359_v5 = vld [vmem:[%s14_s11 + $0x28] sm:$0xff] }
   0x8   : > { %358 = vst [vmem:[%s15_s14 + $0x20] sm:$0xff] %v357_v4  ;;  %360 = vst [vmem:[%s15_s14 + $0x28] sm:$0xff] %v359_v5 }
   0x9   : > { %159 = vsyncadd %s296_s17, 256  ;;  %s305_s18 = scalar_lea.sflag %s17_s15, 3 [#allocation2]  ;;  %v366_v6 = vld [vmem:[%s14_s11 + $0x30] sm:$0xff]  ;;  %v368_v7 = vld [vmem:[%s14_s11 + $0x38] sm:$0xff] }
   0xa   : > { %367 = vst [vmem:[%s15_s14 + $0x30] sm:$0xff] %v366_v6  ;;  %369 = vst [vmem:[%s15_s14 + $0x38] sm:$0xff] %v368_v7 }
   0xb   : > { %208 = vsyncadd %s305_s18, 256 }
   0xc   : > { %392 = dma.done.wait %s17_s15, 256 }
   0xd   : > { %393 = vsyncadd %s17_s15, 4294967040 }
   0xe   : > { %394 = dma.done.wait %s287_s16, 256 }
   0xf   : > { %395 = vsyncadd %s287_s16, 4294967040 }
  0x10   : > { %396 = dma.done.wait %s296_s17, 256 }
  0x11   : > { %397 = vsyncadd %s296_s17, 4294967040 }
  0x12   : > { %398 = dma.done.wait %s305_s18, 256 }
  0x13   : > { %399 = vsyncadd %s305_s18, 4294967040  ;;  %s11_s6 = sadd.s32 1, %s402_s6  }
  0x14   : > { %p8_p0 = scmp.ge.s32.totalorder %s11_s6, 2  }
  0x16   :  { %10 = sbr.rel (!%p8_p0) target bundleno = 1 (0x1), region = 206 }
  0x1d   :  { %218 = vsyncmov [#allocation2] }
  0x20   :  { %s219_s19 = vpop.sfrf %218 }
  0x21   :  { %p372_p1 = scmp.ne.s32.totalorder %s219_s19, 0 }
  0x23   :  { %223 = shalt.err (%p372_p1)  }
  0x24   :  { %225 = vsyncmov [#allocation2 + $0x1] }
  0x27   :  { %s226_s20 = vpop.sfrf %225 }
  0x28   :  { %p373_p2 = scmp.ne.s32.totalorder %s226_s20, 0 }
  0x2a   :  { %230 = shalt.err (%p373_p2)  }
  0x2b   :  { %232 = vsyncmov [#allocation2 + $0x2] }
  0x2e   :  { %s233_s21 = vpop.sfrf %232 }
  0x2f   :  { %p374_p3 = scmp.ne.s32.totalorder %s233_s21, 0 }
  0x31   :  { %237 = shalt.err (%p374_p3)  }
  0x32   :  { %239 = vsyncmov [#allocation2 + $0x3] }
  0x35   :  { %s240_s22 = vpop.sfrf %239 }
  0x36   :  { %p375_p4 = scmp.ne.s32.totalorder %s240_s22, 0 }
  0x38   :  { %244 = shalt.err (%p375_p4)  }
  0x39   :  { %246 = vsyncmov [#allocation2 + $0x4] }
  0x3c   :  { %s247_s23 = vpop.sfrf %246 }
  0x3d   :  { %p376_p5 = scmp.ne.s32.totalorder %s247_s23, 0 }
  0x3f   :  { %251 = shalt.err (%p376_p5)  }
  0x40   :  { %253 = vsyncmov [#allocation2 + $0x5] }
  0x43   :  { %s254_s0 = vpop.sfrf %253 }
  0x44   :  { %p377_p6 = scmp.ne.s32.totalorder %s254_s0, 0 }
  0x46   :  { %258 = shalt.err (%p377_p6)  }
  0x47   :  { %260 = vsyncmov [#allocation2 + $0x6] }
  0x4a   :  { %s261_s1 = vpop.sfrf %260 }
  0x4b   :  { %p378_p7 = scmp.ne.s32.totalorder %s261_s1, 0 }
  0x4d   :  { %265 = shalt.err (%p378_p7)  }
  0x4e   :  { %267 = vsyncmov [#allocation2 + $0x7] }
  0x51   :  { %s268_s24 = vpop.sfrf %267 }
  0x52   :  { %p379_p8 = scmp.ne.s32.totalorder %s268_s24, 0 }
  0x54   :  { %272 = shalt.err (%p379_p8)  }

</bundles_post_ra>
